<compile_context>
chip_gen: v5e
topology: v5e:2x2
jax: 0.10.0
libtpu: 0.0.40
codegen_flags: <defaults>
</compile_context>

<pallas_src>
import math

import jax
import jax.numpy as jnp
from jax import lax
from jax.experimental import pallas as pl
from jax.experimental.pallas import tpu as pltpu


def _attention_kernel(q_ref, k_ref, v_ref, mask_ref, wb_ref, out_ref, attn_ref):
    B, S, D = out_ref.shape
    n = B * S
    scale = jnp.float32(1.0 / math.sqrt(D))

    # Unpack the single packed parameter ref:
    #   rows [0:D)        -> q_linear weight (out, in)
    #   rows [D:2D)       -> out    weight (out, in)
    #   row  2D           -> q_linear bias
    #   row  2D+1         -> out    bias
    wq = wb_ref[0:D, :].astype(jnp.bfloat16)            # (D, D) bf16
    wo = wb_ref[D:2 * D, :].astype(jnp.bfloat16)        # (D, D) bf16
    bq = wb_ref[2 * D:2 * D + 1, :]                     # (1, D) f32
    bo = wb_ref[2 * D + 1:2 * D + 2, :]                 # (1, D) f32

    # In-kernel stack of q/k/v -> one well-filled (3*B*S, D) projection matmul
    # (all three projected with q_linear, faithful to the original module).
    x = jnp.concatenate(
        [q_ref[...].reshape(n, D),
         k_ref[...].reshape(n, D),
         v_ref[...].reshape(n, D)], axis=0).astype(jnp.bfloat16)       # (3n, D)

    # x @ Wq^T via NT dot_general (contract both last dims, no transpose),
    # f32 accumulation on the MXU, single hoisted bias add.
    proj = lax.dot_general(x, wq, (((1,), (1,)), ((), ())),
                           preferred_element_type=jnp.float32) + bq    # (3n, D) f32

    msk = mask_ref[...]                                                # (B, S) i32

    # B is tiny and static -> unrolled; all slices below are static.
    p_list = []
    o_list = []
    for b in range(B):
        qp = proj[b * S:(b + 1) * S].astype(jnp.bfloat16)              # (S, D)
        kp = proj[n + b * S:n + (b + 1) * S].astype(jnp.bfloat16)      # (S, D)
        vp = proj[2 * n + b * S:2 * n + (b + 1) * S].astype(jnp.bfloat16)

        # NT matmul: contract last dims directly (no XLU transpose of kp);
        # 1/sqrt(D) applied to the f32 scores after accumulation.
        scores = lax.dot_general(
            qp, kp, (((1,), (1,)), ((), ())),
            preferred_element_type=jnp.float32) * scale                # (S, S) f32

        # masked_fill(mask == 0, -1e9); mask row broadcasts over query rows.
        scores = jnp.where(msk[b:b + 1, :] == 0, jnp.float32(-1e9), scores)

        # Numerically stable softmax (max-subtraction guarantees a nonzero
        # denominator even for an all-masked row).  Exact normalization: the
        # normalized weights are returned, so they must match the reference.
        m = jnp.max(scores, axis=-1, keepdims=True)
        e = jnp.exp(scores - m)
        s = jnp.sum(e, axis=-1, keepdims=True)
        p = e / s                                                      # (S, S) f32
        p_list.append(p)

        o_list.append(jnp.dot(p.astype(jnp.bfloat16), vp,
                              preferred_element_type=jnp.float32))     # (S, D) f32

    # Hoisted output projection: one (B*S, D) @ (D, D) bf16 MXU push + one
    # bias broadcast, then a single coalesced store per output.
    o_all = jnp.concatenate(o_list, axis=0).astype(jnp.bfloat16)       # (n, D)
    out_all = lax.dot_general(o_all, wo, (((1,), (1,)), ((), ())),
                              preferred_element_type=jnp.float32) + bo  # (n, D)

    out_ref[...] = out_all.reshape(B, S, D)
    attn_ref[...] = jnp.concatenate(p_list, axis=0).reshape(B, S, S)


def attention_pallas(q, k, v, mask, params):
    B, S, D = q.shape
    wq, bq, wo, bo = params["wq"], params["bq"], params["wo"], params["bo"]

    # Pack both weights and both biases into one f32 parameter ref so the
    # gridless prologue issues a single DMA for all parameters.  This is a
    # tiny weight-only concat (done once / constant-foldable in a real model).
    wb = jnp.concatenate([wq, wo, bq[None, :], bo[None, :]], axis=0)   # (2D+2, D)

    vmem = pl.BlockSpec(memory_space=pltpu.MemorySpace.VMEM)

    out, attn = pl.pallas_call(
        _attention_kernel,
        out_shape=(
            jax.ShapeDtypeStruct((B, S, D), jnp.float32),
            jax.ShapeDtypeStruct((B, S, S), jnp.float32),
        ),
        in_specs=[vmem, vmem, vmem, vmem, vmem],
        out_specs=(vmem, vmem),
    )(q, k, v, mask.astype(jnp.int32), wb)
    return out, attn


def attention_reference(q, k, v, mask, params):
    wq, bq, wo, bo = params["wq"], params["bq"], params["wo"], params["bo"]
    D = q.shape[-1]
    qp = q @ wq.T + bq
    kp = k @ wq.T + bq
    vp = v @ wq.T + bq
    scores = jnp.einsum("bqd,bkd->bqk", qp, kp / math.sqrt(D))
    scores = jnp.where(mask[:, None, :] == 0, -1e9, scores)
    p = jax.nn.softmax(scores, axis=-1)
    out = jnp.einsum("bqk,bkd->bqd", p, vp) @ wo.T + bo
    return out, p


def init_params(key, d_model):
    # PyTorch nn.Linear default init: U(-1/sqrt(in), 1/sqrt(in))
    bound = 1.0 / math.sqrt(d_model)
    ks = jax.random.split(key, 8)
    u = lambda k, shape: jax.random.uniform(k, shape, jnp.float32, -bound, bound)
    return {
        "wq": u(ks[0], (d_model, d_model)), "bq": u(ks[1], (d_model,)),
        # k_linear / v_linear exist in __init__ but are unused in forward.
        "wk": u(ks[2], (d_model, d_model)), "bk": u(ks[3], (d_model,)),
        "wv": u(ks[4], (d_model, d_model)), "bv": u(ks[5], (d_model,)),
        "wo": u(ks[6], (d_model, d_model)), "bo": u(ks[7], (d_model,)),
    }


if __name__ == "__main__":
    B, S, D = 2, 8, 32
    key = jax.random.PRNGKey(0)
    kq, kk, kv, km, kp = jax.random.split(key, 5)

    q = jax.random.normal(kq, (B, S, D), jnp.float32)
    k = jax.random.normal(kk, (B, S, D), jnp.float32)
    v = jax.random.normal(kv, (B, S, D), jnp.float32)
    # mask: 1 = keep, 0 = masked; mask out the tail of each sequence.
    mask = (jnp.arange(S)[None, :] < jnp.array([[S], [S - 3]])).astype(jnp.int32)

    params = init_params(kp, D)

    out, attn = attention_pallas(q, k, v, mask, params)
    out = jax.block_until_ready(out)
    attn = jax.block_until_ready(attn)

    ref_out, ref_attn = attention_reference(q, k, v, mask, params)
    # Matmul operands are bf16 (f32 accumulation); softmax normalization is
    # exact, so the attention weights track the f32 reference closely.
    assert jnp.allclose(out, ref_out, atol=5e-2, rtol=5e-2), "output mismatch"
    assert jnp.allclose(attn, ref_attn, atol=3e-2, rtol=5e-2), "attn mismatch"

    print("KERNEL_OK")
</pallas_src>

<mosaic_0001>
module attributes {stable_mosaic.version = 11 : i64} {
  func.func @_attention_kernel(%arg0: memref<2x8x32xf32, #tpu.memory_space<vmem>>, %arg1: memref<2x8x32xf32, #tpu.memory_space<vmem>>, %arg2: memref<2x8x32xf32, #tpu.memory_space<vmem>>, %arg3: memref<2x8xi32, #tpu.memory_space<vmem>>, %arg4: memref<66x32xf32, #tpu.memory_space<vmem>>, %arg5: memref<2x8x32xf32, #tpu.memory_space<vmem>>, %arg6: memref<2x8x8xf32, #tpu.memory_space<vmem>>) attributes {dimension_semantics = [], scalar_prefetch = 0 : i64, scratch_operands = 0 : i64, tpu.core_type = #tpu.core_type<tc>} {
    %c0 = arith.constant 0 : index
    %c0_0 = arith.constant 0 : index
    %0 = vector.load %arg4[%c0, %c0_0] : memref<66x32xf32, #tpu.memory_space<vmem>>, vector<32x32xf32>
    %1 = arith.truncf %0 : vector<32x32xf32> to vector<32x32xbf16>
    %c32 = arith.constant 32 : index
    %c0_1 = arith.constant 0 : index
    %2 = vector.load %arg4[%c32, %c0_1] : memref<66x32xf32, #tpu.memory_space<vmem>>, vector<32x32xf32>
    %3 = arith.truncf %2 : vector<32x32xf32> to vector<32x32xbf16>
    %c64 = arith.constant 64 : index
    %c0_2 = arith.constant 0 : index
    %4 = vector.load %arg4[%c64, %c0_2] : memref<66x32xf32, #tpu.memory_space<vmem>>, vector<1x32xf32>
    %c65 = arith.constant 65 : index
    %c0_3 = arith.constant 0 : index
    %5 = vector.load %arg4[%c65, %c0_3] : memref<66x32xf32, #tpu.memory_space<vmem>>, vector<1x32xf32>
    %c0_4 = arith.constant 0 : index
    %c0_5 = arith.constant 0 : index
    %c0_6 = arith.constant 0 : index
    %6 = vector.load %arg0[%c0_4, %c0_5, %c0_6] : memref<2x8x32xf32, #tpu.memory_space<vmem>>, vector<2x8x32xf32>
    %7 = vector.shape_cast %6 : vector<2x8x32xf32> to vector<16x32xf32>
    %c0_7 = arith.constant 0 : index
    %c0_8 = arith.constant 0 : index
    %c0_9 = arith.constant 0 : index
    %8 = vector.load %arg1[%c0_7, %c0_8, %c0_9] : memref<2x8x32xf32, #tpu.memory_space<vmem>>, vector<2x8x32xf32>
    %9 = vector.shape_cast %8 : vector<2x8x32xf32> to vector<16x32xf32>
    %c0_10 = arith.constant 0 : index
    %c0_11 = arith.constant 0 : index
    %c0_12 = arith.constant 0 : index
    %10 = vector.load %arg2[%c0_10, %c0_11, %c0_12] : memref<2x8x32xf32, #tpu.memory_space<vmem>>, vector<2x8x32xf32>
    %11 = vector.shape_cast %10 : vector<2x8x32xf32> to vector<16x32xf32>
    %12 = tpu.concatenate %7, %9, %11 in 0 : vector<16x32xf32>, vector<16x32xf32>, vector<16x32xf32> -> vector<48x32xf32>
    %13 = arith.truncf %12 : vector<48x32xf32> to vector<48x32xbf16>
    %cst = arith.constant dense<0.000000e+00> : vector<48x32xf32>
    %14 = tpu.matmul %13, %1, %cst {dimension_numbers = #tpu.dot_dimension_numbers<[1], [1], [0], [0], [0, 0, 1, 0], [], []>} : vector<48x32xbf16>, vector<32x32xbf16>, vector<48x32xf32> -> vector<48x32xf32>
    %15 = vector.broadcast %4 : vector<1x32xf32> to vector<48x32xf32>
    %16 = arith.addf %14, %15 : vector<48x32xf32>
    %c0_13 = arith.constant 0 : index
    %c0_14 = arith.constant 0 : index
    %17 = vector.load %arg3[%c0_13, %c0_14] : memref<2x8xi32, #tpu.memory_space<vmem>>, vector<2x8xi32>
    %18 = vector.extract_strided_slice %16 {offsets = [0, 0], sizes = [8, 32], strides = [1, 1]} : vector<48x32xf32> to vector<8x32xf32>
    %19 = arith.truncf %18 : vector<8x32xf32> to vector<8x32xbf16>
    %20 = vector.extract_strided_slice %16 {offsets = [16, 0], sizes = [8, 32], strides = [1, 1]} : vector<48x32xf32> to vector<8x32xf32>
    %21 = arith.truncf %20 : vector<8x32xf32> to vector<8x32xbf16>
    %22 = vector.extract_strided_slice %16 {offsets = [32, 0], sizes = [8, 32], strides = [1, 1]} : vector<48x32xf32> to vector<8x32xf32>
    %23 = arith.truncf %22 : vector<8x32xf32> to vector<8x32xbf16>
    %cst_15 = arith.constant dense<0.000000e+00> : vector<8x8xf32>
    %24 = tpu.matmul %19, %21, %cst_15 {dimension_numbers = #tpu.dot_dimension_numbers<[1], [1], [0], [0], [0, 0, 1, 0], [], []>} : vector<8x32xbf16>, vector<8x32xbf16>, vector<8x8xf32> -> vector<8x8xf32>
    %cst_16 = arith.constant 0.176776692 : f32
    %25 = vector.broadcast %cst_16 : f32 to vector<8x8xf32>
    %26 = arith.mulf %24, %25 : vector<8x8xf32>
    %27 = vector.extract_strided_slice %17 {offsets = [0, 0], sizes = [1, 8], strides = [1, 1]} : vector<2x8xi32> to vector<1x8xi32>
    %c0_i32 = arith.constant 0 : i32
    %28 = vector.broadcast %c0_i32 : i32 to vector<1x8xi32>
    %29 = arith.cmpi eq, %27, %28 : vector<1x8xi32>
    %cst_17 = arith.constant -1.000000e+09 : f32
    %30 = vector.shape_cast %29 : vector<1x8xi1> to vector<1x8xi1>
    %31 = vector.broadcast %30 : vector<1x8xi1> to vector<8x8xi1>
    %32 = vector.broadcast %cst_17 : f32 to vector<8x8xf32>
    %33 = arith.select %31, %32, %26 : vector<8x8xi1>, vector<8x8xf32>
    %cst_18 = arith.constant dense<0xFF800000> : vector<8xf32>
    %34 = vector.multi_reduction <maximumf>, %33, %cst_18 [1] : vector<8x8xf32> to vector<8xf32>
    %35 = vector.shape_cast %34 : vector<8xf32> to vector<8x1xf32>
    %36 = vector.broadcast %35 : vector<8x1xf32> to vector<8x8xf32>
    %37 = arith.subf %33, %36 : vector<8x8xf32>
    %38 = math.exp %37 : vector<8x8xf32>
    %cst_19 = arith.constant dense<0.000000e+00> : vector<8xf32>
    %39 = vector.multi_reduction <add>, %38, %cst_19 [1] : vector<8x8xf32> to vector<8xf32>
    %40 = vector.shape_cast %39 : vector<8xf32> to vector<8x1xf32>
    %41 = vector.broadcast %40 : vector<8x1xf32> to vector<8x8xf32>
    %42 = arith.divf %38, %41 : vector<8x8xf32>
    %43 = arith.truncf %42 : vector<8x8xf32> to vector<8x8xbf16>
    %cst_20 = arith.constant dense<0.000000e+00> : vector<8x32xf32>
    %44 = tpu.matmul %43, %23, %cst_20 {dimension_numbers = #tpu.dot_dimension_numbers<[1], [0], [0], [1], [0, 0, 1, 1], [], []>} : vector<8x8xbf16>, vector<8x32xbf16>, vector<8x32xf32> -> vector<8x32xf32>
    %45 = vector.extract_strided_slice %16 {offsets = [8, 0], sizes = [8, 32], strides = [1, 1]} : vector<48x32xf32> to vector<8x32xf32>
    %46 = arith.truncf %45 : vector<8x32xf32> to vector<8x32xbf16>
    %47 = vector.extract_strided_slice %16 {offsets = [24, 0], sizes = [8, 32], strides = [1, 1]} : vector<48x32xf32> to vector<8x32xf32>
    %48 = arith.truncf %47 : vector<8x32xf32> to vector<8x32xbf16>
    %49 = vector.extract_strided_slice %16 {offsets = [40, 0], sizes = [8, 32], strides = [1, 1]} : vector<48x32xf32> to vector<8x32xf32>
    %50 = arith.truncf %49 : vector<8x32xf32> to vector<8x32xbf16>
    %cst_21 = arith.constant dense<0.000000e+00> : vector<8x8xf32>
    %51 = tpu.matmul %46, %48, %cst_21 {dimension_numbers = #tpu.dot_dimension_numbers<[1], [1], [0], [0], [0, 0, 1, 0], [], []>} : vector<8x32xbf16>, vector<8x32xbf16>, vector<8x8xf32> -> vector<8x8xf32>
    %cst_22 = arith.constant 0.176776692 : f32
    %52 = vector.broadcast %cst_22 : f32 to vector<8x8xf32>
    %53 = arith.mulf %51, %52 : vector<8x8xf32>
    %54 = vector.extract_strided_slice %17 {offsets = [1, 0], sizes = [1, 8], strides = [1, 1]} : vector<2x8xi32> to vector<1x8xi32>
    %c0_i32_23 = arith.constant 0 : i32
    %55 = vector.broadcast %c0_i32_23 : i32 to vector<1x8xi32>
    %56 = arith.cmpi eq, %54, %55 : vector<1x8xi32>
    %cst_24 = arith.constant -1.000000e+09 : f32
    %57 = vector.shape_cast %56 : vector<1x8xi1> to vector<1x8xi1>
    %58 = vector.broadcast %57 : vector<1x8xi1> to vector<8x8xi1>
    %59 = vector.broadcast %cst_24 : f32 to vector<8x8xf32>
    %60 = arith.select %58, %59, %53 : vector<8x8xi1>, vector<8x8xf32>
    %cst_25 = arith.constant dense<0xFF800000> : vector<8xf32>
    %61 = vector.multi_reduction <maximumf>, %60, %cst_25 [1] : vector<8x8xf32> to vector<8xf32>
    %62 = vector.shape_cast %61 : vector<8xf32> to vector<8x1xf32>
    %63 = vector.broadcast %62 : vector<8x1xf32> to vector<8x8xf32>
    %64 = arith.subf %60, %63 : vector<8x8xf32>
    %65 = math.exp %64 : vector<8x8xf32>
    %cst_26 = arith.constant dense<0.000000e+00> : vector<8xf32>
    %66 = vector.multi_reduction <add>, %65, %cst_26 [1] : vector<8x8xf32> to vector<8xf32>
    %67 = vector.shape_cast %66 : vector<8xf32> to vector<8x1xf32>
    %68 = vector.broadcast %67 : vector<8x1xf32> to vector<8x8xf32>
    %69 = arith.divf %65, %68 : vector<8x8xf32>
    %70 = arith.truncf %69 : vector<8x8xf32> to vector<8x8xbf16>
    %cst_27 = arith.constant dense<0.000000e+00> : vector<8x32xf32>
    %71 = tpu.matmul %70, %50, %cst_27 {dimension_numbers = #tpu.dot_dimension_numbers<[1], [0], [0], [1], [0, 0, 1, 1], [], []>} : vector<8x8xbf16>, vector<8x32xbf16>, vector<8x32xf32> -> vector<8x32xf32>
    %72 = tpu.concatenate %44, %71 in 0 : vector<8x32xf32>, vector<8x32xf32> -> vector<16x32xf32>
    %73 = arith.truncf %72 : vector<16x32xf32> to vector<16x32xbf16>
    %cst_28 = arith.constant dense<0.000000e+00> : vector<16x32xf32>
    %74 = tpu.matmul %73, %3, %cst_28 {dimension_numbers = #tpu.dot_dimension_numbers<[1], [1], [0], [0], [0, 0, 1, 0], [], []>} : vector<16x32xbf16>, vector<32x32xbf16>, vector<16x32xf32> -> vector<16x32xf32>
    %75 = vector.broadcast %5 : vector<1x32xf32> to vector<16x32xf32>
    %76 = arith.addf %74, %75 : vector<16x32xf32>
    %77 = vector.shape_cast %76 : vector<16x32xf32> to vector<2x8x32xf32>
    %c0_29 = arith.constant 0 : index
    %c0_30 = arith.constant 0 : index
    %c0_31 = arith.constant 0 : index
    %78 = vector.load %arg5[%c0_29, %c0_30, %c0_31] : memref<2x8x32xf32, #tpu.memory_space<vmem>>, vector<2x8x32xf32>
    tpu.vector_store %arg5[%c0_29, %c0_30, %c0_31], %77 {strides = array<i32>} : memref<2x8x32xf32, #tpu.memory_space<vmem>>, vector<2x8x32xf32>,
    %79 = tpu.concatenate %42, %69 in 0 : vector<8x8xf32>, vector<8x8xf32> -> vector<16x8xf32>
    %80 = vector.shape_cast %79 : vector<16x8xf32> to vector<2x8x8xf32>
    %c0_32 = arith.constant 0 : index
    %c0_33 = arith.constant 0 : index
    %c0_34 = arith.constant 0 : index
    %81 = vector.load %arg6[%c0_32, %c0_33, %c0_34] : memref<2x8x8xf32, #tpu.memory_space<vmem>>, vector<2x8x8xf32>
    tpu.vector_store %arg6[%c0_32, %c0_33, %c0_34], %80 {strides = array<i32>} : memref<2x8x8xf32, #tpu.memory_space<vmem>>, vector<2x8x8xf32>,
    return
  }
}

</mosaic_0001>

<bundles_post_ra>
// kernel: tpu_custom_call.1
= control target key start
LH: loop header
LB: loop body
LE: loop exit
PB: predicated region body
PF: predicated region fallthrough
CT: control target
= control target key end

     0   :  { %12 = vsyncpa [#allocation3], 0  ;;  %vm49_vm0 = vcmask 261120   ;;  %s495_s0 = inlined_call_operand.vmem [shape: f32[2,8,32], index: 0, kind: input, shape index: {}]   ;;  %s496_s1 = inlined_call_operand.vmem [shape: f32[2,8,32], index: 1, kind: input, shape index: {}]   ;;  %s497_s2 = inlined_call_operand.vmem [shape: f32[2,8,32], index: 2, kind: input, shape index: {}]   ;;  %s498_s3 = inlined_call_operand.vmem [shape: s32[2,8], index: 3, kind: input, shape index: {}]   ;;  %s499_s4 = inlined_call_operand.vmem [shape: f32[66,32], index: 4, kind: input, shape index: {}]   ;;  %s500_s5 = inlined_call_operand.hbm [shape: f32[2,8,32], index: 5, kind: output, shape index: {0}]   ;;  %s501_s6 = inlined_call_operand.hbm [shape: f32[2,8,8], index: 6, kind: output, shape index: {1}]  }
   0x1   :  { %v27_v0 = vld [vmem:[%s499_s4 + $0x10] sm:$0xff]  ;;  %v28_v1 = vld [vmem:[%s499_s4 + $0x18] sm:$0xff]  ;;  %v25_v3 = vld [vmem:[%s499_s4] sm:$0xff] }
   0x2   :  { %v30_v2 = vpack.c.bf16 %v28_v1, %v27_v0  ;;  %v26_v4 = vld [vmem:[%s499_s4 + $0x8] sm:$0xff] }
   0x4   :  { %v63_v5 = vsel %vm49_vm0, %v30_v2, 0 }
   0x5   :  { %71 = vmatpush.bf16.xpose.msra.mxu0 %v63_v5  ;;  %307 = vmatpush.bf16.xpose.msra.mxu3 %v63_v5 }
   0x6   :  { %13 = vsyncpa [#allocation5], 0  ;;  %v29_v6 = vpack.c.bf16 %v26_v4, %v25_v3  ;;  %v39_v8 = vld [vmem:[%s495_s0] sm:$0xff]  ;;  %v40_v9 = vld [vmem:[%s495_s0 + $0x8] sm:$0xff]  ;;  %vm147_vm1 = vcmask 1043456   ;;  %v376_v41 = vmov 0  }
   0x7   :  { %v45_v10 = vpack.c.bf16 %v40_v9, %v39_v8  ;;  %v41_v11 = vld [vmem:[%s496_s1] sm:$0xff]  ;;  %v42_v12 = vld [vmem:[%s496_s1 + $0x8] sm:$0xff]  ;;  %vm118_vm4 = vcmask 64512   ;;  %s377_s25 = smov [#allocation4]   ;;  %s282_s29 = sshll.u32 %s501_s6, 4  ;;  %s283_s29 = int_to_ptr.hbm [resolvable:$true] %s282_s29 }
   0x8   :  { %v60_v7 = vsel %vm49_vm0, %v29_v6, 0  ;;  %v46_v13 = vpack.c.bf16 %v42_v12, %v41_v11  ;;  %v43_v14 = vld [vmem:[%s497_s2] sm:$0xff]  ;;  %v44_v15 = vld [vmem:[%s497_s2 + $0x8] sm:$0xff]  ;;  %s280_s26 = sshll.u32 %s377_s25, 4  ;;  %s378_s30 = smov 128   ;;  %s281_s26 = int_to_ptr.vmem [resolvable:$true] %s280_s26 }
   0x9   :  { %v47_v16 = vpack.c.bf16 %v44_v15, %v43_v14  ;;  %v314_v19 = vld [vmem:[%s499_s4 + $0x40] ss:$0 sm:$0xff]  ;;  %s379_s7 = smov 8   ;;  %s380_s10 = smov [#allocation2]  }
   0xa   :  { %v89_v40 = vld [vmem:[%s498_s3] sm:$0x3]  ;;  %s267_s11 = sshll.u32 %s380_s10, 4  ;;  %s269_s14 = sshll.u32 %s500_s5, 4  ;;  %s268_s11 = int_to_ptr.vmem [resolvable:$true] %s267_s11  ;;  %s270_s14 = int_to_ptr.hbm [resolvable:$true] %s269_s14 }
   0xb   :  { %vm113_vm2 = vcmp.eq.s32.totalorder %v89_v40, 0  ;;  %v315_v40 = vld [vmem:[%s499_s4 + $0x41] ss:$0 sm:$0xff] }
   0xc   :  { %v114_v42 = vsel %vm113_vm2, 1, %v376_v41 }
   0xd   :  { %72 = vmatpush.bf16.xpose.msra.mxu0 %v60_v7  ;;  %308 = vmatpush.bf16.xpose.msra.mxu3 %v60_v7  ;;  %v115_v43 = vperm.slane %v114_v42, 0  ;;  %v187_v49 = vperm.slane %v114_v42, 1 }
   0xf   :  { %vm116_vm3 = vcmp.eq.s32.totalorder %v115_v43, 1  ;;  %vm188_vm5 = vcmp.eq.s32.totalorder %v187_v49, 1 }
  0x14   :  { %299 = vmatmul.msk.bf16.vlgmr.msra.gmra.mxu0 %vm49_vm0, %v45_v10  ;;  %301 = vmatmul.msk.bf16.vlgmr.msra.gmra.mxu3 %vm49_vm0, %v47_v16 }
  0x24   :  { %300 = vmatmul.msk.bf16.gmra.mxu0 %vm49_vm0, %v46_v13 }
  0x91   :  { %v74_v17 = vpop.f32.mrf.mxu0 }
  0x92   :  { %v75_v24 = vadd.f32 %v314_v19, %v74_v17 }
  0x94   :  { %v90_v27 = vpack.c.bf16 %v75_v24, %v75_v24 }
  0x97   :  { %v84_v32 = vpop.f32.mrf.mxu3 }
  0x98   :  { %v85_v33 = vadd.f32 %v314_v19, %v84_v32  ;;  %v32_v32 = vld [vmem:[%s499_s4 + $0x28] sm:$0xff] }
  0x99   :  { %v76_v18 = vpop.f32.mrf.mxu0 }
  0x9a   :  { %v77_v30 = vadd.f32 %v314_v19, %v76_v18  ;;  %v92_v34 = vpack.c.bf16 %v85_v33, %v85_v33 }
  0x9c   :  { %v164_v31 = vpack.c.bf16 %v77_v30, %v77_v30  ;;  %v149_v38 = vsel %vm147_vm1, %v92_v34, 0 }
  0x9d   :  { %158 = vmatpush.bf16.msra.mxu2 %v149_v38 }
  0x9f   :  { %v86_v35 = vpop.f32.mrf.mxu3 }
  0xa0   :  { %v87_v36 = vadd.f32 %v314_v19, %v86_v35 }
  0xa1   :  { %v79_v20 = vpop.f32.mrf.mxu0 }
  0xa2   :  { %v80_v21 = vadd.f32 %v314_v19, %v79_v20  ;;  %v166_v37 = vpack.c.bf16 %v87_v36, %v87_v36 }
  0xa4   :  { %v91_v22 = vpack.c.bf16 %v80_v21, %v80_v21  ;;  %v219_v39 = vsel %vm147_vm1, %v166_v37, 0 }
  0xa5   :  { %228 = vmatpush.bf16.msrb.mxu2 %v219_v39 }
  0xa6   :  { %v97_v23 = vsel %vm49_vm0, %v91_v22, 0 }
  0xa7   :  { %106 = vmatpush.bf16.xpose.msra.mxu1 %v97_v23 }
  0xa9   :  { %v81_v25 = vpop.f32.mrf.mxu0 }
  0xaa   :  { %v82_v26 = vadd.f32 %v314_v19, %v81_v25 }
  0xac   :  { %v165_v28 = vpack.c.bf16 %v82_v26, %v82_v26 }
  0xae   :  { %302 = vmatmul.msk.bf16.vlgmr.msra.gmra.mxu1 %vm49_vm0, %v90_v27  ;;  %v171_v29 = vsel %vm49_vm0, %v165_v28, 0  ;;  %v33_v27 = vld [vmem:[%s499_s4 + $0x30] sm:$0xff]  ;;  %v34_v28 = vld [vmem:[%s499_s4 + $0x38] sm:$0xff] }
  0xaf   :  { %180 = vmatpush.bf16.xpose.msrb.mxu3 %v171_v29  ;;  %v36_v29 = vpack.c.bf16 %v34_v28, %v33_v27 }
  0xb1   :  { %v243_v30 = vsel %vm49_vm0, %v36_v29, 0 }
  0xb2   :  { %251 = vmatpush.bf16.xpose.msrb.mxu1 %v243_v30 }
  0xb6   :  { %304 = vmatmul.msk.bf16.vlgmr.msrb.gmra.mxu3 %vm49_vm0, %v164_v31  ;;  %v31_v31 = vld [vmem:[%s499_s4 + $0x20] sm:$0xff] }
  0xb7   :  { %v35_v33 = vpack.c.bf16 %v32_v32, %v31_v31 }
  0xb9   :  { %v240_v34 = vsel %vm49_vm0, %v35_v33, 0 }
  0xba   :  { %252 = vmatpush.bf16.xpose.msrb.mxu1 %v240_v34 }
 0x12b   :  { %v108_v44 = vpop.f32.mrf.mxu1 }
 0x12c   :  { %v112_v45 = vmul.f32 0.17677669, %v108_v44 }
 0x12e   :  { %v117_v46 = vsel %vm116_vm3, -1e+09, %v112_v45 }
 0x12f   :  { %v119_v47 = vsel %vm118_vm4, %v117_v46, -inf }
 0x130   :  { %120 = vmax.xlane.f32.xlu0 %v119_v47 }
 0x133   :  { %v110_v48 = vpop.f32.mrf.mxu1 }
 0x139   :  { %v182_v50 = vpop.f32.mrf.mxu3 }
 0x13a   :  { %v186_v51 = vmul.f32 0.17677669, %v182_v50 }
 0x13c   :  { %v189_v52 = vsel %vm188_vm5, -1e+09, %v186_v51 }
 0x13d   :  { %v190_v53 = vsel %vm118_vm4, %v189_v52, -inf }
 0x13e   :  { %191 = vmax.xlane.f32.xlu0 %v190_v53 }
 0x141   :  { %v184_v54 = vpop.f32.mrf.mxu3 }
 0x1a3   :  { %v121_v55 = vpop.xlane.xlu0 %120 }
 0x1a4   :  { %v122_v56 = vsub.f32 %v117_v46, %v121_v55 }
 0x1a6   :  { %v123_v57 = vmul.f32 1.442695, %v122_v56 }
 0x1a8   :  { %316 = vpow2.f32 %v123_v57 }
 0x1ae   :  { %v317_v58 = vpop.eup %316 }
 0x1af   :  { %v125_v59 = vsel %vm118_vm4, %v317_v58, 0.0 }
 0x1b0   :  { %126 = vadd.xlane.f32.xlu1 %v125_v59 }
 0x1b1   :  { %v192_v60 = vpop.xlane.xlu0 %191 }
 0x1b2   :  { %v193_v61 = vsub.f32 %v189_v52, %v192_v60 }
 0x1b4   :  { %v194_v62 = vmul.f32 1.442695, %v193_v61 }
 0x1b6   :  { %318 = vpow2.f32 %v194_v62 }
 0x1bc   :  { %v319_v63 = vpop.eup %318 }
 0x1bd   :  { %v196_v0 = vsel %vm118_vm4, %v319_v63, 0.0 }
 0x1be   :  { %197 = vadd.xlane.f32.xlu1 %v196_v0 }
 0x223   :  { %v127_v1 = vpop.xlane.xlu1 %126 }
 0x224   :  { %320 = vrcp.f32 %v127_v1  ;;  %v139_v5 = vand.u32 2147483648, %v127_v1  ;;  %v137_v7 = vand.u32 2147483647, %v127_v1  ;;  %vm133_vm7 = vweird.f32 %v127_v1 }
 0x226   :  { %v140_v10 = vor.u32 1.1754944e-38, %v139_v5  ;;  %vm138_vm9 = vcmp.eq.f32.partialorder %v137_v7, 8.507059e+37 }
 0x22a   :  { %v321_v2 = vpop.eup %320 }
 0x22b   :  { %v129_v3 = vmul.f32 %v321_v2, %v127_v1  ;;  %vm134_vm6 = vweird.f32 %v321_v2 }
 0x22c   :  { %vm135_vm8 = vmor %vm133_vm7, %vm134_vm6 }
 0x22d   :  { %v130_v4 = vsub.f32 1.0, %v129_v3 }
 0x22f   :  { %v131_v6 = vmul.f32 %v321_v2, %v130_v4 }
 0x231   :  { %v132_v8 = vadd.f32 %v321_v2, %v131_v6  ;;  %v198_v9 = vpop.xlane.xlu1 %197 }
 0x232   :  { %322 = vrcp.f32 %v198_v9  ;;  %v210_v18 = vand.u32 2147483648, %v198_v9  ;;  %v208_v20 = vand.u32 2147483647, %v198_v9  ;;  %vm204_vm11 = vweird.f32 %v198_v9 }
 0x233   :  { %v136_v11 = vsel %vm135_vm8, %v321_v2, %v132_v8 }
 0x234   :  { %v141_v12 = vsel %vm138_vm9, %v140_v10, %v136_v11  ;;  %v211_v22 = vor.u32 1.1754944e-38, %v210_v18  ;;  %vm209_vm13 = vcmp.eq.f32.partialorder %v208_v20, 8.507059e+37 }
 0x235   :  { %v142_v13 = vmul.f32 %v317_v58, %v141_v12 }
 0x237   :  { %v143_v14 = vpack.c.bf16 %v142_v13, %v142_v13  ;;  %261 = vst.msk [vmem:[#allocation4] sm:$0xff] %vm118_vm4, %v142_v13 }
 0x238   :  { %v323_v15 = vpop.eup %322 }
 0x239   :  { %v200_v16 = vmul.f32 %v323_v15, %v198_v9  ;;  %303 = vmatmul.msk.bf16.vlgmr.msra.gmra.mxu2 %vm118_vm4, %v143_v14  ;;  %vm205_vm10 = vweird.f32 %v323_v15 }
 0x23a   :  { %vm206_vm12 = vmor %vm204_vm11, %vm205_vm10 }
 0x23b   :  { %v201_v17 = vsub.f32 1.0, %v200_v16 }
 0x23d   :  { %v202_v19 = vmul.f32 %v323_v15, %v201_v17 }
 0x23f   :  { %v203_v21 = vadd.f32 %v323_v15, %v202_v19 }
 0x241   :  { %v207_v23 = vsel %vm206_vm12, %v323_v15, %v203_v21 }
 0x242   :  { %v212_v24 = vsel %vm209_vm13, %v211_v22, %v207_v23 }
 0x243   :  { %v213_v25 = vmul.f32 %v319_v63, %v212_v24 }
 0x245   :  { %262 = vst.msk [vmem:[#allocation4 + $0x8] sm:$0xff] %vm118_vm4, %v213_v25  ;;  %v214_v26 = vpack.c.bf16 %v213_v25, %v213_v25 }
 0x246   :  { %288 = dma.vmem_to_hbm [thread:$0]  %s281_s26, 256, %s283_s29, [#allocation5], %s378_s30, %s378_s30, %s379_s7  }
 0x249   :  { %305 = vmatmul.msk.bf16.vlgmr.msrb.gmra.mxu2 %vm118_vm4, %v214_v26 }
 0x2bc   :  { %v160_v35 = vpop.f32.mrf.mxu2 }
 0x2c4   :  { %v162_v36 = vpop.f32.mrf.mxu2 }
 0x2cc   :  { %v230_v37 = vpop.f32.mrf.mxu2 }
 0x2cd   :  { %v234_v38 = vpack.c.bf16 %v230_v37, %v160_v35 }
 0x2cf   :  { %306 = vmatmul.msk.bf16.vlgmr.msrb.gmra.mxu1 %vm49_vm0, %v234_v38 }
 0x2d4   :  { %v232_v39 = vpop.f32.mrf.mxu2 }
 0x34c   :  { %v254_v41 = vpop.f32.mrf.mxu1 }
 0x34d   :  { %v255_v42 = vadd.f32 %v315_v40, %v254_v41 }
 0x34f   :  { %259 = vst.msk [vmem:[#allocation2] sm:$0xff] %vm49_vm0, %v255_v42 }
 0x354   :  { %v256_v43 = vpop.f32.mrf.mxu1 }
 0x355   :  { %v257_v44 = vadd.f32 %v315_v40, %v256_v43 }
 0x357   :  { %260 = vst.msk [vmem:[#allocation2 + $0x8] sm:$0xff] %vm49_vm0, %v257_v44 }
 0x358   :  { %275 = dma.vmem_to_hbm [thread:$0]  %s268_s11, 256, %s270_s14, [#allocation3], %s378_s30, %s378_s30, %s379_s7  }
 0x359   :  { %372 = dma.done.wait [#allocation3], 256  }
 0x35a   :  { %373 = vsyncadd [#allocation3], 4294967040 }
 0x35b   :  { %374 = dma.done.wait [#allocation5], 256  }
 0x35c   :  { %375 = vsyncadd [#allocation5], 4294967040 }
 0x35d   :  { %297 = vsyncpa [#allocation3], 1 }
 0x35e   :  { %298 = vsyncpa [#allocation5], 1 }

</bundles_post_ra>
